<compile_context>
chip_gen: v7x
topology: tpu7x:2x2x1
jax: 0.10.0
libtpu: 0.0.40
codegen_flags: <defaults>
</compile_context>

<pallas_src>
import jax
import jax.numpy as jnp
from jax.experimental import pallas as pl
from jax.experimental.pallas import tpu as pltpu


def _round_up(x: int, m: int) -> int:
    return ((x + m - 1) // m) * m


def _gate_kernel(x_ref, w_ref, o_ref):
    # x_ref: (tile_t, H)   w_ref: (H, E_pad)   o_ref: (tile_t, E_pad)
    # Single lane-dense MXU matmul with f32 accumulation, cast to the requested
    # out dtype (matches cublas_mm(..., out_dtype=dtype)).
    o_ref[...] = jnp.dot(
        x_ref[...], w_ref[...], preferred_element_type=jnp.float32
    ).astype(o_ref.dtype)


def _vmem_capacity_bytes() -> int:
    """Physical VMEM per core; conservative fallback = v7x (smallest at 64 MiB)."""
    try:
        return int(getattr(pltpu.get_tpu_info(), "vmem_capacity_bytes"))
    except Exception:
        return 64 << 20


def _default_tile_t() -> int:
    """Token-tile default per TPU generation (HBM-bound op, amortize step overhead)."""
    try:
        kind = jax.devices()[0].device_kind.lower()
    except Exception:
        kind = ""
    # v5e: 0.82 TB/s -> a 256-row tile DMA already dwarfs the ~0.35 us step cost.
    # v6e/v7x: faster HBM -> 512-row tiles halve the per-step overhead share.
    return 256 if "v5" in kind else 512


def qwen3_gate_matmul(hidden_states: jax.Array, w_t: jax.Array, num_experts: int,
                      out_dtype=None, tile_t: int | None = None) -> jax.Array:
    """logits = hidden_states @ weight.T with weight already prepared as
    w_t = pad(weight.T) of shape (H, E_pad), E_pad a multiple of 128."""
    T, H = hidden_states.shape
    Hw, E_pad = w_t.shape
    assert H == Hw, "hidden_size mismatch"
    assert E_pad % 128 == 0 and num_experts <= E_pad
    out_dtype = out_dtype or hidden_states.dtype

    x_bytes = jnp.dtype(hidden_states.dtype).itemsize
    w_bytes = jnp.dtype(w_t.dtype).itemsize
    o_bytes = jnp.dtype(out_dtype).itemsize
    # Sublane packing: 8 rows/vreg for 32-bit, 16 for 16-bit, 32 for 8-bit dtypes.
    sub = max(8, 32 // max(1, x_bytes))

    if tile_t is None:
        tile_t = _default_tile_t()
    tile_t = max(sub, min(tile_t, _round_up(T, sub)))
    tile_t = _round_up(tile_t, sub)
    # Balance the grid when T barely exceeds one tile: two ~equal steps instead of
    # one full + one sliver, so v7x's second TensorCore gets real work.
    if T > tile_t:
        tile_t = min(tile_t, _round_up(pl.cdiv(T, 2), sub))

    def _vmem_need(tt: int) -> int:
        return (2 * tt * H * x_bytes          # activation tile, double-buffered
                + 2 * H * E_pad * w_bytes     # weight block (budget 2x even if Buffered(1))
                + 2 * tt * E_pad * o_bytes    # output tile, double-buffered
                + tt * E_pad * 4)             # f32 MXU accumulator before the cast

    vmem_cap = _vmem_capacity_bytes()
    budget = (vmem_cap * 3) // 4
    while tile_t > sub and _vmem_need(tile_t) > budget:
        tile_t = _round_up(max(sub, tile_t // 2), sub)

    grid = (pl.cdiv(T, tile_t),)   # no token padding; last block may be partial
    vmem_limit = min(max(_vmem_need(tile_t) + (8 << 20), 32 << 20), vmem_cap)

    cost = pl.CostEstimate(
        flops=2 * T * H * num_experts,
        transcendentals=0,
        bytes_accessed=(T * H * x_bytes + num_experts * H * w_bytes
                        + T * num_experts * o_bytes),
    )

    def _build(single_buffer_weight: bool):
        # Constant block index -> the weight tile never changes; single-buffering
        # it just frees H*E_pad*w_bytes of VMEM for bigger token tiles.
        w_kwargs = {"pipeline_mode": pl.Buffered(1)} if single_buffer_weight else {}
        return pl.pallas_call(
            _gate_kernel,
            out_shape=jax.ShapeDtypeStruct((T, E_pad), out_dtype),
            grid_spec=pltpu.PrefetchScalarGridSpec(
                num_scalar_prefetch=0,
                grid=grid,
                in_specs=[
                    pl.BlockSpec((tile_t, H), lambda i: (i, 0)),
                    pl.BlockSpec((H, E_pad), lambda i: (0, 0), **w_kwargs),
                ],
                out_specs=pl.BlockSpec((tile_t, E_pad), lambda i: (i, 0)),
            ),
            compiler_params=pltpu.CompilerParams(
                dimension_semantics=("parallel",),
                vmem_limit_bytes=vmem_limit,
            ),
            cost_estimate=cost,
        )

    try:
        out_padded = _build(True)(hidden_states, w_t)
    except Exception:
        # Older jax versions may reject a buffer count of 1; fall back to default.
        out_padded = _build(False)(hidden_states, w_t)

    # Padded expert columns are exact zeros; slice them off before any top-k.
    if E_pad != num_experts:
        return out_padded[:, :num_experts]
    return out_padded


class Qwen3Gate:
    """Pallas-TPU equivalent of the PyTorch Qwen3Gate forward.

    Weight prep (transpose + expert-pad to a lane-dense multiple of 128) happens
    once at construction, so the per-call forward path is a single pallas_call
    (plus an expert-column slice only when num_experts % 128 != 0).

    Routing (top-k / renormalize) is intentionally NOT applied here: the PyTorch
    module asserts `not apply_routing`; routing happens inside the MoE op.
    """

    def __init__(self, weight: jax.Array, top_k: int = 8, out_dtype=None):
        E, H = weight.shape
        self.num_experts = E
        self.hidden_size = H
        self.top_k = top_k
        self.out_dtype = out_dtype or weight.dtype
        e_pad = _round_up(E, 128)
        w_t = jnp.transpose(weight)              # (H, E)
        if e_pad != E:
            w_t = jnp.pad(w_t, ((0, 0), (0, e_pad - E)))
        self.w_t = w_t                           # (H, E_pad), prepared once

    def __call__(self, hidden_states: jax.Array) -> jax.Array:
        return qwen3_gate_matmul(hidden_states, self.w_t, self.num_experts,
                                 out_dtype=self.out_dtype)


if __name__ == "__main__":
    # Small shapes consistent with the module: tokens=8, hidden=32, experts=16.
    num_tokens = 8
    hidden_size = 32
    num_experts = 16
    dtype = jnp.bfloat16  # module's out_dtype

    key = jax.random.PRNGKey(0)
    kx, kw = jax.random.split(key)
    hidden_states = jax.random.normal(
        kx, (num_tokens, hidden_size), jnp.float32).astype(dtype)
    # Deterministic parameter init (nn.Parameter((num_experts, hidden_size))).
    weight = jax.random.normal(
        kw, (num_experts, hidden_size), jnp.float32).astype(dtype)

    gate = Qwen3Gate(weight, top_k=4, out_dtype=dtype)
    logits = gate(hidden_states)
    jax.block_until_ready(logits)

    # Reference check in plain JAX (f32 accumulate, cast to out_dtype).
    ref = jnp.dot(hidden_states.astype(jnp.float32),
                  weight.astype(jnp.float32).T).astype(dtype)
    assert logits.shape == (num_tokens, num_experts)
    assert logits.dtype == dtype
    assert jnp.allclose(logits.astype(jnp.float32),
                        ref.astype(jnp.float32), atol=1e-2, rtol=1e-2)

    # NOTE: top-k routing / renormalization is intentionally NOT applied here —
    # the PyTorch module asserts `not apply_routing`; routing happens inside MoE.
    print("KERNEL_OK")
</pallas_src>

<mosaic_0001>
module attributes {stable_mosaic.version = 11 : i64} {
  func.func @_gate_kernel(%arg0: i32, %arg1: memref<16x32xbf16, #tpu.memory_space<vmem>>, %arg2: memref<32x128xbf16, #tpu.memory_space<vmem>>, %arg3: memref<16x128xbf16, #tpu.memory_space<vmem>>) attributes {dimension_semantics = [#tpu.dimension_semantics<parallel>], iteration_bounds = array<i64: 1>, scalar_prefetch = 0 : i64, scratch_operands = 0 : i64, tpu.core_type = #tpu.core_type<tc>, window_params = [{transform_indices = @transform_0, window_bounds = array<i64: 16, 32>}, {pipeline_mode = #tpu.pipeline_mode<synchronous>, transform_indices = @transform_1, window_bounds = array<i64: 32, 128>}, {transform_indices = @transform_2, window_bounds = array<i64: 16, 128>}]} {
    %c0 = arith.constant 0 : index
    %c0_0 = arith.constant 0 : index
    %0 = vector.load %arg1[%c0, %c0_0] : memref<16x32xbf16, #tpu.memory_space<vmem>>, vector<16x32xbf16>
    %c0_1 = arith.constant 0 : index
    %c0_2 = arith.constant 0 : index
    %1 = vector.load %arg2[%c0_1, %c0_2] : memref<32x128xbf16, #tpu.memory_space<vmem>>, vector<32x128xbf16>
    %cst = arith.constant dense<0.000000e+00> : vector<16x128xf32>
    %2 = tpu.matmul %0, %1, %cst {dimension_numbers = #tpu.dot_dimension_numbers<[1], [0], [0], [1], [0, 0, 1, 1], [], []>} : vector<16x32xbf16>, vector<32x128xbf16>, vector<16x128xf32> -> vector<16x128xf32>
    %3 = arith.truncf %2 : vector<16x128xf32> to vector<16x128xbf16>
    %c0_3 = arith.constant 0 : index
    %c0_4 = arith.constant 0 : index
    %4 = vector.load %arg3[%c0_3, %c0_4] : memref<16x128xbf16, #tpu.memory_space<vmem>>, vector<16x128xbf16>
    tpu.vector_store %arg3[%c0_3, %c0_4], %3 {strides = array<i32>} : memref<16x128xbf16, #tpu.memory_space<vmem>>, vector<16x128xbf16>,
    return
  }
  func.func @transform_0(%arg0: i32) -> (i32, i32) {
    %c0_i32 = arith.constant 0 : i32
    %c0_i32_0 = arith.constant 0 : i32
    return %arg0, %c0_i32 : i32, i32
  }
  func.func @transform_1(%arg0: i32) -> (i32, i32) {
    %c0_i32 = arith.constant 0 : i32
    %c0_i32_0 = arith.constant 0 : i32
    %c0_i32_1 = arith.constant 0 : i32
    return %c0_i32, %c0_i32_0 : i32, i32
  }
  func.func @transform_2(%arg0: i32) -> (i32, i32) {
    %c0_i32 = arith.constant 0 : i32
    %c0_i32_0 = arith.constant 0 : i32
    return %arg0, %c0_i32 : i32, i32
  }
}

module attributes {stable_mosaic.version = 11 : i64} {
  func.func @_gate_kernel(%arg0: i32, %arg1: memref<16x32xbf16, #tpu.memory_space<vmem>>, %arg2: memref<32x128xbf16, #tpu.memory_space<vmem>>, %arg3: memref<16x128xbf16, #tpu.memory_space<vmem>>) attributes {dimension_semantics = [#tpu.dimension_semantics<parallel>], iteration_bounds = array<i64: 1>, scalar_prefetch = 0 : i64, scratch_operands = 0 : i64, tpu.core_type = #tpu.core_type<tc>, window_params = [{transform_indices = @transform_0, window_bounds = array<i64: 16, 32>}, {pipeline_mode = #tpu.pipeline_mode<synchronous>, transform_indices = @transform_1, window_bounds = array<i64: 32, 128>}, {transform_indices = @transform_2, window_bounds = array<i64: 16, 128>}]} {
    %c0 = arith.constant 0 : index
    %c0_0 = arith.constant 0 : index
    %0 = vector.load %arg1[%c0, %c0_0] : memref<16x32xbf16, #tpu.memory_space<vmem>>, vector<16x32xbf16>
    %c0_1 = arith.constant 0 : index
    %c0_2 = arith.constant 0 : index
    %1 = vector.load %arg2[%c0_1, %c0_2] : memref<32x128xbf16, #tpu.memory_space<vmem>>, vector<32x128xbf16>
    %cst = arith.constant dense<0.000000e+00> : vector<16x128xf32>
    %2 = tpu.matmul %0, %1, %cst {dimension_numbers = #tpu.dot_dimension_numbers<[1], [0], [0], [1], [0, 0, 1, 1], [], []>} : vector<16x32xbf16>, vector<32x128xbf16>, vector<16x128xf32> -> vector<16x128xf32>
    %3 = arith.truncf %2 : vector<16x128xf32> to vector<16x128xbf16>
    %c0_3 = arith.constant 0 : index
    %c0_4 = arith.constant 0 : index
    %4 = vector.load %arg3[%c0_3, %c0_4] : memref<16x128xbf16, #tpu.memory_space<vmem>>, vector<16x128xbf16>
    tpu.vector_store %arg3[%c0_3, %c0_4], %3 {strides = array<i32>} : memref<16x128xbf16, #tpu.memory_space<vmem>>, vector<16x128xbf16>,
    return
  }
  func.func @transform_0(%arg0: i32) -> (i32, i32) {
    %c0_i32 = arith.constant 0 : i32
    %c0_i32_0 = arith.constant 0 : i32
    return %arg0, %c0_i32 : i32, i32
  }
  func.func @transform_1(%arg0: i32) -> (i32, i32) {
    %c0_i32 = arith.constant 0 : i32
    %c0_i32_0 = arith.constant 0 : i32
    %c0_i32_1 = arith.constant 0 : i32
    return %c0_i32, %c0_i32_0 : i32, i32
  }
  func.func @transform_2(%arg0: i32) -> (i32, i32) {
    %c0_i32 = arith.constant 0 : i32
    %c0_i32_0 = arith.constant 0 : i32
    return %arg0, %c0_i32 : i32, i32
  }
}

</mosaic_0001>

<bundles_post_ra>
// kernel: tpu_custom_call.1
= control target key start
LH: loop header
LB: loop body
LE: loop exit
PB: predicated region body
PF: predicated region fallthrough
CT: control target
= control target key end

     0   :  { %7 = vsyncpa [#allocation3], 0  ;;  %s310_s0 = inlined_call_operand.hbm [shape: bf16[8,32], index: 0, kind: input, shape index: {}]   ;;  %s311_s1 = inlined_call_operand.hbm [shape: bf16[32,128], index: 1, kind: input, shape index: {}]   ;;  %s312_s2 = inlined_call_operand.hbm [shape: bf16[8,128], index: 2, kind: output, shape index: {}]  }
   0x1   :  { %8 = vsyncpa [#allocation6], 0 }
   0x2   :  { %9 = vsyncpa [#allocation4], 0 }
   0x3   :  { %14 = vsyncadd [#allocation3], 64  ;;  %s243_s9 = smov [#allocation2]   ;;  %s171_s13 = scalar_lea.hbm %s310_s0, 64 }
   0x4   :  { %s15_s10 = sshll.u32 %s243_s9, 4  ;;  %p172_p0 = scmp.ne.s32.totalorder %s310_s0, %s171_s13  ;;  %s16_s10 = int_to_ptr.vmem [resolvable:$true] %s15_s10 }
   0x5   :  { %p175_p1 = scmp.lt.u32.totalorder %s171_s13, %s310_s0 }
   0x7   :  { %p177_p2 = pnand %p175_p1, %p172_p0 }
   0x9   :  { %180 = shalt.err (!%p177_p2)
}
   0xa   :  { %s181_s18 = scalar_lea.vmem %s16_s10, 64  ;;  %s185_s19 = scalar_lea.vmem %s16_s10, 128 }
   0xb   :  { %p182_p3 = scmp.ne.s32.totalorder %s16_s10, %s181_s18  ;;  %p186_p4 = scmp.lt.s32.totalorder %s16_s10, %s16_s10 }
   0xc   :  { %p187_p5 = scmp.lt.s32.totalorder %s185_s19, %s181_s18 }
   0xe   :  { %p188_p6 = por %p187_p5, %p186_p4 }
  0x10   :  { %p189_p7 = pnand %p188_p6, %p182_p3 }
  0x12   :  { %192 = shalt.err (!%p189_p7)
}
  0x13   :  { %s244_s20 = smov 64   ;;  %s245_s21 = smov 4  }
  0x14   :  { %21 = dma.hbm_to_vmem [thread:$0]  %s310_s0, 64, %s16_s10, [#allocation3], %s244_s20, %s244_s20, %s245_s21  }
  0x15   :  { %s246_s24 = smov [#allocation5]   ;;  %s193_s28 = scalar_lea.hbm %s311_s1, 256 }
  0x16   :  { %s27_s25 = sshll.u32 %s246_s24, 4  ;;  %p194_p8 = scmp.ne.s32.totalorder %s311_s1, %s193_s28  ;;  %s28_s25 = int_to_ptr.vmem [resolvable:$true] %s27_s25 }
  0x17   :  { %p197_p9 = scmp.lt.u32.totalorder %s193_s28, %s311_s1 }
  0x19   :  { %p199_p10 = pnand %p197_p9, %p194_p8 }
  0x1b   :  { %202 = shalt.err (!%p199_p10)
}
  0x1c   :  { %s203_s5 = scalar_lea.vmem %s28_s25, 256  ;;  %p208_p12 = scmp.lt.s32.totalorder %s28_s25, %s28_s25 }
  0x1d   :  { %p204_p11 = scmp.ne.s32.totalorder %s28_s25, %s203_s5  ;;  %p209_p13 = scmp.lt.s32.totalorder %s203_s5, %s203_s5 }
  0x1f   :  { %p210_p0 = por %p209_p13, %p208_p12 }
  0x21   :  { %p211_p1 = pnand %p210_p0, %p204_p11 }
  0x23   :  { %214 = shalt.err (!%p211_p1)
}
  0x24   :  { %33 = dma.hbm_to_vmem [thread:$0]  %s311_s1, 256, %s28_s25, [#allocation6], %s244_s20, %s244_s20, %s245_s21  }
  0x25   :  { %237 = dma.done.wait [#allocation3], 128  }
  0x26   :  { %238 = vsyncadd [#allocation3], 4294967168 }
  0x27   :  { %239 = dma.done.wait [#allocation6], 256  }
  0x28   :  { %240 = vsyncadd [#allocation6], 4294967040  ;;  %v247_v0 = vmov 0.0   ;;  %vm248_vm0 = vmmov 0   ;;  %v168_v1 = vld [vmem:[#allocation5] sm:$0xff]   ;;  %v169_v2 = vld [vmem:[#allocation5 + $0x8] sm:$0xff]  }
  0x29   :  { %153 = vmatprep.subr.bf16.mxu0 %v247_v0  ;;  %157 = vmatprep.mubr.msk.bf16.mxu0 %vm248_vm0, %v247_v0  ;;  %v170_v3 = vld [vmem:[#allocation2] sm:$0xff]   ;;  %vm64_vm1 = vcmask 261120  }
  0x2a   :  { %154 = vmatpush3.bf16.msra.mxu0 %v168_v1 }
  0x2b   :  { %155 = vmatprep.subr.bf16.mxu0 %v247_v0 }
  0x2e   :  { %156 = vmatpush3.bf16.msra.mxu0 %v169_v2 }
  0x31   :  { %158 = vmatmul.mubr.msk.bf16.vlgmr.msra.gmra.mrb[0].mxu0 %vm64_vm1, %v170_v3 }
 0x104   :  { %v102_v4 = vpop.f32.mrb[0].mxu0 }
 0x105   :  { %v159_v5 = vpop.f32.mrb[1].mxu0 }
 0x106   :  { %v105_v6 = vpop.f32.mrb[2].mxu0 }
 0x107   :  { %v148_v7 = vpack.c.bf16 %v105_v6, %v102_v4  ;;  %v160_v8 = vpop.f32.mrb[3].mxu0 }
 0x109   :  { %149 = vst [vmem:[#allocation7] sm:$0xff] %v148_v7  }
 0x10a   :  { %123 = vsyncadd [#allocation4], 64  ;;  %s249_s1 = smov [#allocation7]  }
 0x10b   :  { %s124_s7 = sshll.u32 %s249_s1, 4  ;;  %s125_s7 = int_to_ptr.vmem [resolvable:$true] %s124_s7 }
 0x10c   :  { %s215_s8 = scalar_lea.vmem %s125_s7, 64  ;;  %s219_s9 = scalar_lea.vmem %s125_s7, 128 }
 0x10d   :  { %p216_p2 = scmp.ne.s32.totalorder %s125_s7, %s215_s8  ;;  %p220_p3 = scmp.lt.s32.totalorder %s125_s7, %s125_s7 }
 0x10e   :  { %p221_p4 = scmp.lt.s32.totalorder %s219_s9, %s215_s8 }
 0x110   :  { %p222_p5 = por %p221_p4, %p220_p3 }
 0x112   :  { %p223_p6 = pnand %p222_p5, %p216_p2 }
 0x114   :  { %226 = shalt.err (!%p223_p6)
}
 0x115   :  { %s227_s12 = scalar_lea.hbm %s312_s2, 64 }
 0x116   :  { %p228_p7 = scmp.ne.s32.totalorder %s312_s2, %s227_s12  ;;  %p231_p8 = scmp.lt.u32.totalorder %s227_s12, %s312_s2 }
 0x118   :  { %p233_p9 = pnand %p231_p8, %p228_p7 }
 0x11a   :  { %236 = shalt.err (!%p233_p9)
}
 0x11b   :  { %130 = dma.vmem_to_hbm [thread:$0]  %s125_s7, 64, %s312_s2, [#allocation4], %s244_s20, %s244_s20, %s245_s21  }
 0x11c   :  { %241 = dma.done.wait [#allocation4], 128  }
 0x11d   :  { %242 = vsyncadd [#allocation4], 4294967168 }
 0x11e   :  { %134 = vsyncpa [#allocation3], 1 }
 0x11f   :  { %135 = vsyncpa [#allocation6], 1 }
 0x120   :  { %136 = vsyncpa [#allocation4], 1 }

// kernel: tpu_custom_call.1
= control target key start
LH: loop header
LB: loop body
LE: loop exit
PB: predicated region body
PF: predicated region fallthrough
CT: control target
= control target key end

     0   :  { %7 = vsyncpa [#allocation3], 0  ;;  %s310_s0 = inlined_call_operand.hbm [shape: bf16[8,32], index: 0, kind: input, shape index: {}]   ;;  %s311_s1 = inlined_call_operand.hbm [shape: bf16[32,128], index: 1, kind: input, shape index: {}]   ;;  %s312_s2 = inlined_call_operand.hbm [shape: bf16[8,128], index: 2, kind: output, shape index: {}]  }
   0x1   :  { %8 = vsyncpa [#allocation6], 0 }
   0x2   :  { %9 = vsyncpa [#allocation4], 0 }
   0x3   :  { %14 = vsyncadd [#allocation3], 64  ;;  %s243_s9 = smov [#allocation2]   ;;  %s171_s13 = scalar_lea.hbm %s310_s0, 64 }
   0x4   :  { %s15_s10 = sshll.u32 %s243_s9, 4  ;;  %p172_p0 = scmp.ne.s32.totalorder %s310_s0, %s171_s13  ;;  %s16_s10 = int_to_ptr.vmem [resolvable:$true] %s15_s10 }
   0x5   :  { %p175_p1 = scmp.lt.u32.totalorder %s171_s13, %s310_s0 }
   0x7   :  { %p177_p2 = pnand %p175_p1, %p172_p0 }
   0x9   :  { %180 = shalt.err (!%p177_p2)
}
   0xa   :  { %s181_s18 = scalar_lea.vmem %s16_s10, 64  ;;  %s185_s19 = scalar_lea.vmem %s16_s10, 128 }
   0xb   :  { %p182_p3 = scmp.ne.s32.totalorder %s16_s10, %s181_s18  ;;  %p186_p4 = scmp.lt.s32.totalorder %s16_s10, %s16_s10 }
   0xc   :  { %p187_p5 = scmp.lt.s32.totalorder %s185_s19, %s181_s18 }
   0xe   :  { %p188_p6 = por %p187_p5, %p186_p4 }
  0x10   :  { %p189_p7 = pnand %p188_p6, %p182_p3 }
  0x12   :  { %192 = shalt.err (!%p189_p7)
}
  0x13   :  { %s244_s20 = smov 64   ;;  %s245_s21 = smov 4  }
  0x14   :  { %21 = dma.hbm_to_vmem [thread:$0]  %s310_s0, 64, %s16_s10, [#allocation3], %s244_s20, %s244_s20, %s245_s21  }
  0x15   :  { %s246_s24 = smov [#allocation5]   ;;  %s193_s28 = scalar_lea.hbm %s311_s1, 256 }
  0x16   :  { %s27_s25 = sshll.u32 %s246_s24, 4  ;;  %p194_p8 = scmp.ne.s32.totalorder %s311_s1, %s193_s28  ;;  %s28_s25 = int_to_ptr.vmem [resolvable:$true] %s27_s25 }
  0x17   :  { %p197_p9 = scmp.lt.u32.totalorder %s193_s28, %s311_s1 }
  0x19   :  { %p199_p10 = pnand %p197_p9, %p194_p8 }
  0x1b   :  { %202 = shalt.err (!%p199_p10)
}
  0x1c   :  { %s203_s5 = scalar_lea.vmem %s28_s25, 256  ;;  %p208_p12 = scmp.lt.s32.totalorder %s28_s25, %s28_s25 }
  0x1d   :  { %p204_p11 = scmp.ne.s32.totalorder %s28_s25, %s203_s5  ;;  %p209_p13 = scmp.lt.s32.totalorder %s203_s5, %s203_s5 }
  0x1f   :  { %p210_p0 = por %p209_p13, %p208_p12 }
  0x21   :  { %p211_p1 = pnand %p210_p0, %p204_p11 }
  0x23   :  { %214 = shalt.err (!%p211_p1)
}
  0x24   :  { %33 = dma.hbm_to_vmem [thread:$0]  %s311_s1, 256, %s28_s25, [#allocation6], %s244_s20, %s244_s20, %s245_s21  }
  0x25   :  { %237 = dma.done.wait [#allocation3], 128  }
  0x26   :  { %238 = vsyncadd [#allocation3], 4294967168 }
  0x27   :  { %239 = dma.done.wait [#allocation6], 256  }
  0x28   :  { %240 = vsyncadd [#allocation6], 4294967040  ;;  %v247_v0 = vmov 0.0   ;;  %vm248_vm0 = vmmov 0   ;;  %v168_v1 = vld [vmem:[#allocation5] sm:$0xff]   ;;  %v169_v2 = vld [vmem:[#allocation5 + $0x8] sm:$0xff]  }
  0x29   :  { %153 = vmatprep.subr.bf16.mxu0 %v247_v0  ;;  %157 = vmatprep.mubr.msk.bf16.mxu0 %vm248_vm0, %v247_v0  ;;  %v170_v3 = vld [vmem:[#allocation2] sm:$0xff]   ;;  %vm64_vm1 = vcmask 261120  }
  0x2a   :  { %154 = vmatpush3.bf16.msra.mxu0 %v168_v1 }
  0x2b   :  { %155 = vmatprep.subr.bf16.mxu0 %v247_v0 }
  0x2e   :  { %156 = vmatpush3.bf16.msra.mxu0 %v169_v2 }
  0x31   :  { %158 = vmatmul.mubr.msk.bf16.vlgmr.msra.gmra.mrb[0].mxu0 %vm64_vm1, %v170_v3 }
 0x104   :  { %v102_v4 = vpop.f32.mrb[0].mxu0 }
 0x105   :  { %v159_v5 = vpop.f32.mrb[1].mxu0 }
 0x106   :  { %v105_v6 = vpop.f32.mrb[2].mxu0 }
 0x107   :  { %v148_v7 = vpack.c.bf16 %v105_v6, %v102_v4  ;;  %v160_v8 = vpop.f32.mrb[3].mxu0 }
 0x109   :  { %149 = vst [vmem:[#allocation7] sm:$0xff] %v148_v7  }
 0x10a   :  { %123 = vsyncadd [#allocation4], 64  ;;  %s249_s1 = smov [#allocation7]  }
 0x10b   :  { %s124_s7 = sshll.u32 %s249_s1, 4  ;;  %s125_s7 = int_to_ptr.vmem [resolvable:$true] %s124_s7 }
 0x10c   :  { %s215_s8 = scalar_lea.vmem %s125_s7, 64  ;;  %s219_s9 = scalar_lea.vmem %s125_s7, 128 }
 0x10d   :  { %p216_p2 = scmp.ne.s32.totalorder %s125_s7, %s215_s8  ;;  %p220_p3 = scmp.lt.s32.totalorder %s125_s7, %s125_s7 }
 0x10e   :  { %p221_p4 = scmp.lt.s32.totalorder %s219_s9, %s215_s8 }
 0x110   :  { %p222_p5 = por %p221_p4, %p220_p3 }
 0x112   :  { %p223_p6 = pnand %p222_p5, %p216_p2 }
 0x114   :  { %226 = shalt.err (!%p223_p6)
}
 0x115   :  { %s227_s12 = scalar_lea.hbm %s312_s2, 64 }
 0x116   :  { %p228_p7 = scmp.ne.s32.totalorder %s312_s2, %s227_s12  ;;  %p231_p8 = scmp.lt.u32.totalorder %s227_s12, %s312_s2 }
 0x118   :  { %p233_p9 = pnand %p231_p8, %p228_p7 }
 0x11a   :  { %236 = shalt.err (!%p233_p9)
}
 0x11b   :  { %130 = dma.vmem_to_hbm [thread:$0]  %s125_s7, 64, %s312_s2, [#allocation4], %s244_s20, %s244_s20, %s245_s21  }
 0x11c   :  { %241 = dma.done.wait [#allocation4], 128  }
 0x11d   :  { %242 = vsyncadd [#allocation4], 4294967168 }
 0x11e   :  { %134 = vsyncpa [#allocation3], 1 }
 0x11f   :  { %135 = vsyncpa [#allocation6], 1 }
 0x120   :  { %136 = vsyncpa [#allocation4], 1 }

</bundles_post_ra>
